<compile_context>
chip_gen: v7x
topology: tpu7x:2x2x1
jax: 0.10.0
libtpu: 0.0.40
codegen_flags: <defaults>
</compile_context>

<pallas_src>
import functools

import jax
import jax.numpy as jnp
from jax.experimental import pallas as pl
from jax.experimental.pallas import tpu as pltpu

_MiB = 1024 * 1024
_BF16, _F32 = 2, 4


def _round_up(x, n):
    return ((x + n - 1) // n) * n


def _vmem_capacity_bytes():
    try:
        info = pltpu.get_tpu_info()
        return int(getattr(info, "vmem_capacity_bytes", 64 * _MiB))
    except Exception:  # non-TPU / unavailable -> conservative (v7x-sized)
        return 64 * _MiB


def _gen_budgets():
    """(planning budget, vmem_limit_bytes, tk_target, streaming tm_target)."""
    cap = _vmem_capacity_bytes()
    if cap >= 120 * _MiB:            # v5e / v6e: 128 MiB VMEM per TensorCore
        return 96 * _MiB, 100 * _MiB, 1024, 1024
    # v7x: 64 MiB physical shared by 2 TCs -> leave pipeline/compiler headroom
    return 44 * _MiB, 56 * _MiB, 1024, 512


# ---------------------------------------------------------------------------
# Kernels
# ---------------------------------------------------------------------------

def _ffn_resident_kernel(x_ref, w1_ref, b1_ref, w2_ref, b2_ref, o_ref):
    # relu(x @ W1 + b1) @ W2 + b2 with both weights fully VMEM-resident
    # (constant index_maps -> fetched from HBM once for the whole grid).
    h = jnp.dot(x_ref[...], w1_ref[...], preferred_element_type=jnp.float32)
    h = jnp.maximum(h + b1_ref[...], 0.0)
    # TODO(synk): dropout with p>0 would need pltpu.prng_random_bits; p=0.0 is identity.
    out = jnp.dot(h.astype(w2_ref.dtype), w2_ref[...],
                  preferred_element_type=jnp.float32)
    o_ref[...] = (out + b2_ref[...]).astype(o_ref.dtype)


def _ffn_stream_kernel(x_ref, w1_ref, b1_ref, w2_ref, b2_ref, o_ref, acc_ref,
                       *, tk):
    k = pl.program_id(1)

    @pl.when(k == 0)
    def _init():
        # Fold the output bias into the accumulator init (saves a finalize add).
        acc_ref[...] = jnp.broadcast_to(b2_ref[...], acc_ref.shape
                                        ).astype(jnp.float32)

    # b1 is fully resident; slice the current ff chunk in-kernel.
    b1_chunk = b1_ref[:, pl.ds(pl.multiple_of(k * tk, tk), tk)]
    h = jnp.dot(x_ref[...], w1_ref[...], preferred_element_type=jnp.float32)
    h = jnp.maximum(h + b1_chunk, 0.0)
    # TODO(synk): dropout with p>0 would need pltpu.prng_random_bits; p=0.0 is identity.
    acc_ref[...] += jnp.dot(h.astype(w2_ref.dtype), w2_ref[...],
                            preferred_element_type=jnp.float32)

    @pl.when(k == pl.num_programs(1) - 1)
    def _finalize():
        o_ref[...] = acc_ref[...].astype(o_ref.dtype)


# ---------------------------------------------------------------------------
# Parameter preparation (hoisted out of the per-call path)
# ---------------------------------------------------------------------------

def prepare_ffn_params(w1, b1, w2, b2):
    """Pad to lane-dense shapes + cast weights to bf16 ONCE.

    w1: (dim, ff_dim), b1: (ff_dim,), w2: (ff_dim, dim), b2: (dim,)."""
    dim, ff_dim = w1.shape
    plan_budget, vmem_limit, tk_target, tm_stream = _gen_budgets()

    dim_p = _round_up(dim, 128)

    # Choose the ff chunk size first, shrinking it while the implied padding
    # waste is large, then pad ff to a MULTIPLE OF tk so the reduction grid
    # never drops trailing columns (fixes the ff_p // tk truncation bug).
    ff_128 = _round_up(ff_dim, 128)
    tk = tk_target
    while tk > 128 and (_round_up(ff_dim, tk) - ff_128) * 4 >= tk:
        tk //= 2
    tk = min(tk, ff_128)
    ff_pad = _round_up(ff_dim, tk)

    # Weight-residency decision (conservative: counts double-buffered weight
    # windows even though their index maps are constant).
    tm_res = 256
    resident_fp = (2 * (dim_p * ff_pad + ff_pad * dim_p) * _BF16   # W1 + W2
                   + 2 * tm_res * dim_p * _BF16                    # x tile
                   + 2 * tm_res * dim_p * _F32                     # out tile
                   + 2 * ff_pad * _F32 + 2 * dim_p * _F32          # biases
                   + tm_res * ff_pad * (_F32 + _BF16))             # h intermediate
    resident = resident_fp <= plan_budget

    def _pad2(a, r, c):
        return a if a.shape == (r, c) else jnp.pad(
            a, ((0, r - a.shape[0]), (0, c - a.shape[1])))

    w1p = _pad2(w1, dim_p, ff_pad).astype(jnp.bfloat16)
    w2p = _pad2(w2, ff_pad, dim_p).astype(jnp.bfloat16)
    b1p = (b1 if ff_pad == ff_dim else jnp.pad(b1, (0, ff_pad - ff_dim))
           ).reshape(1, ff_pad).astype(jnp.float32)
    b2p = (b2 if dim_p == dim else jnp.pad(b2, (0, dim_p - dim))
           ).reshape(1, dim_p).astype(jnp.float32)

    return dict(w1p=w1p, b1p=b1p, w2p=w2p, b2p=b2p,
                tk=tk, resident=resident, tm_resident=tm_res,
                tm_stream=tm_stream, vmem_limit=vmem_limit,
                plan_budget=plan_budget)


# ---------------------------------------------------------------------------
# Forward
# ---------------------------------------------------------------------------

@functools.partial(jax.jit, static_argnames=("tk", "resident", "tm_target",
                                              "vmem_limit", "plan_budget"))
def _ffn_forward(x, w1p, b1p, w2p, b2p, *, tk, resident, tm_target,
                 vmem_limit, plan_budget):
    batch, seq, dim = x.shape
    dim_p, ff_pad = w1p.shape
    m = batch * seq
    out_dtype = x.dtype
    out_bytes = x.dtype.itemsize

    # Row tile: multiple of 16 (bf16 sublane packing), capped by target.
    tm = min(tm_target, _round_up(m, 16))

    # Small-VMEM (v7x) megacore: keep >= 2 M blocks when there's enough work.
    if plan_budget < 64 * _MiB and m >= 512 and _round_up(m, tm) // tm < 2:
        tm = max(256, _round_up((m + 1) // 2, 256))

    if not resident:
        # Shrink tm until the streaming tile set fits the planning budget.
        def _fp(tm_):
            return (2 * tm_ * dim_p * _BF16 + 2 * dim_p * tk * _BF16
                    + 2 * tk * dim_p * _BF16 + 2 * ff_pad * _F32
                    + 2 * dim_p * _F32 + 2 * tm_ * dim_p * out_bytes
                    + tm_ * dim_p * _F32 + tm_ * tk * (_F32 + _BF16))
        while tm > 256 and _fp(tm) > plan_budget:
            tm = max(256, _round_up(tm // 2, 16))

    m_p = _round_up(m, tm)
    n_m_blocks = m_p // tm

    x2 = x.reshape(m, dim)
    if (m_p, dim_p) != (m, dim):
        x2 = jnp.pad(x2, ((0, m_p - m), (0, dim_p - dim)))
    x2 = x2.astype(jnp.bfloat16)

    w_bytes = (w1p.size + w2p.size) * _BF16
    cost = pl.CostEstimate(
        flops=4 * m_p * dim_p * ff_pad,               # two matmuls
        transcendentals=0,
        bytes_accessed=(m_p * dim_p * (_BF16 + out_bytes)
                        + (w_bytes if resident else w_bytes * n_m_blocks)
                        + (ff_pad + dim_p) * _F32))

    if resident:
        out2 = pl.pallas_call(
            _ffn_resident_kernel,
            out_shape=jax.ShapeDtypeStruct((m_p, dim_p), out_dtype),
            grid_spec=pltpu.PrefetchScalarGridSpec(
                num_scalar_prefetch=0,
                grid=(n_m_blocks,),
                in_specs=[
                    pl.BlockSpec((tm, dim_p), lambda i: (i, 0)),      # x rows
                    pl.BlockSpec((dim_p, ff_pad), lambda i: (0, 0)),  # W1 (resident)
                    pl.BlockSpec((1, ff_pad), lambda i: (0, 0)),      # b1
                    pl.BlockSpec((ff_pad, dim_p), lambda i: (0, 0)),  # W2 (resident)
                    pl.BlockSpec((1, dim_p), lambda i: (0, 0)),       # b2
                ],
                out_specs=pl.BlockSpec((tm, dim_p), lambda i: (i, 0)),
            ),
            compiler_params=pltpu.CompilerParams(
                dimension_semantics=("parallel",),
                vmem_limit_bytes=int(vmem_limit)),
            cost_estimate=cost,
        )(x2, w1p, b1p, w2p, b2p)
    else:
        out2 = pl.pallas_call(
            functools.partial(_ffn_stream_kernel, tk=tk),
            out_shape=jax.ShapeDtypeStruct((m_p, dim_p), out_dtype),
            grid_spec=pltpu.PrefetchScalarGridSpec(
                num_scalar_prefetch=0,
                grid=(n_m_blocks, ff_pad // tk),
                in_specs=[
                    pl.BlockSpec((tm, dim_p), lambda i, k: (i, 0)),   # x rows
                    pl.BlockSpec((dim_p, tk), lambda i, k: (0, k)),   # W1 chunk
                    pl.BlockSpec((1, ff_pad), lambda i, k: (0, 0)),   # b1 (resident)
                    pl.BlockSpec((tk, dim_p), lambda i, k: (k, 0)),   # W2 chunk
                    pl.BlockSpec((1, dim_p), lambda i, k: (0, 0)),    # b2
                ],
                out_specs=pl.BlockSpec((tm, dim_p), lambda i, k: (i, 0)),
                scratch_shapes=[pltpu.VMEM((tm, dim_p), jnp.float32)],
            ),
            compiler_params=pltpu.CompilerParams(
                dimension_semantics=("parallel", "arbitrary"),
                vmem_limit_bytes=int(vmem_limit)),
            cost_estimate=cost,
        )(x2, w1p, b1p, w2p, b2p)

    return out2[:m, :dim].reshape(batch, seq, dim)


def feed_forward_relu(x, w1, b1, w2, b2):
    """relu(x @ w1 + b1) @ w2 + b2  (== the PyTorch module with dropout p=0)."""
    p = prepare_ffn_params(w1, b1, w2, b2)
    tm_target = p["tm_resident"] if p["resident"] else p["tm_stream"]
    return _ffn_forward(x, p["w1p"], p["b1p"], p["w2p"], p["b2p"],
                        tk=p["tk"], resident=p["resident"],
                        tm_target=tm_target, vmem_limit=p["vmem_limit"],
                        plan_budget=p["plan_budget"])


def init_params(key, dim, ff_dim, dtype=jnp.float32):
    """nn.Linear-style init; weights stored transposed (in, out) for x @ W."""
    k1, k2, k3, k4 = jax.random.split(key, 4)
    bound1 = 1.0 / (dim ** 0.5)
    bound2 = 1.0 / (ff_dim ** 0.5)
    w1 = jax.random.uniform(k1, (dim, ff_dim), dtype, -bound1, bound1)
    b1 = jax.random.uniform(k2, (ff_dim,), dtype, -bound1, bound1)
    w2 = jax.random.uniform(k3, (ff_dim, dim), dtype, -bound2, bound2)
    b2 = jax.random.uniform(k4, (dim,), dtype, -bound2, bound2)
    return w1, b1, w2, b2


if __name__ == "__main__":
    batch, seq, dim, ff_dim = 2, 8, 32, 64

    key = jax.random.PRNGKey(0)
    kx, kp = jax.random.split(key)
    x = jax.random.normal(kx, (batch, seq, dim), jnp.float32)
    w1, b1, w2, b2 = init_params(kp, dim, ff_dim)

    # Reference (PyTorch module in eval mode / dropout p=0).
    ref = jnp.maximum(x @ w1 + b1, 0.0) @ w2 + b2

    # Hoisted pad/cast (done once), then the kernel call.
    params = prepare_ffn_params(w1, b1, w2, b2)
    tm_target = params["tm_resident"] if params["resident"] else params["tm_stream"]
    out = _ffn_forward(x, params["w1p"], params["b1p"], params["w2p"],
                       params["b2p"], tk=params["tk"],
                       resident=params["resident"], tm_target=tm_target,
                       vmem_limit=params["vmem_limit"],
                       plan_budget=params["plan_budget"])
    out = jax.block_until_ready(out)
    assert out.shape == (batch, seq, dim)
    assert jnp.allclose(out, ref, atol=3e-2, rtol=3e-2), (
        float(jnp.max(jnp.abs(out - ref))))

    # Also validate the streaming (ff-chunked) fallback path.
    out_s = _ffn_forward(x, params["w1p"], params["b1p"], params["w2p"],
                         params["b2p"], tk=params["tk"], resident=False,
                         tm_target=params["tm_stream"],
                         vmem_limit=params["vmem_limit"],
                         plan_budget=params["plan_budget"])
    out_s = jax.block_until_ready(out_s)
    assert jnp.allclose(out_s, ref, atol=3e-2, rtol=3e-2), (
        float(jnp.max(jnp.abs(out_s - ref))))

    print("KERNEL_OK")
</pallas_src>

<mosaic_0001>
module attributes {stable_mosaic.version = 11 : i64} {
  func.func @_ffn_resident_kernel(%arg0: i32, %arg1: memref<16x128xbf16, #tpu.memory_space<vmem>>, %arg2: memref<128x128xbf16, #tpu.memory_space<vmem>>, %arg3: memref<1x128xf32, #tpu.memory_space<vmem>>, %arg4: memref<128x128xbf16, #tpu.memory_space<vmem>>, %arg5: memref<1x128xf32, #tpu.memory_space<vmem>>, %arg6: memref<16x128xf32, #tpu.memory_space<vmem>>) attributes {dimension_semantics = [#tpu.dimension_semantics<parallel>], iteration_bounds = array<i64: 1>, scalar_prefetch = 0 : i64, scratch_operands = 0 : i64, tpu.core_type = #tpu.core_type<tc>, window_params = [{transform_indices = @transform_0, window_bounds = array<i64: 16, 128>}, {pipeline_mode = #tpu.pipeline_mode<synchronous>, transform_indices = @transform_1, window_bounds = array<i64: 128, 128>}, {pipeline_mode = #tpu.pipeline_mode<synchronous>, transform_indices = @transform_2, window_bounds = array<i64: 1, 128>}, {pipeline_mode = #tpu.pipeline_mode<synchronous>, transform_indices = @transform_3, window_bounds = array<i64: 128, 128>}, {pipeline_mode = #tpu.pipeline_mode<synchronous>, transform_indices = @transform_4, window_bounds = array<i64: 1, 128>}, {transform_indices = @transform_5, window_bounds = array<i64: 16, 128>}]} {
    %c0 = arith.constant 0 : index
    %c0_0 = arith.constant 0 : index
    %0 = vector.load %arg1[%c0, %c0_0] : memref<16x128xbf16, #tpu.memory_space<vmem>>, vector<16x128xbf16>
    %c0_1 = arith.constant 0 : index
    %c0_2 = arith.constant 0 : index
    %1 = vector.load %arg2[%c0_1, %c0_2] : memref<128x128xbf16, #tpu.memory_space<vmem>>, vector<128x128xbf16>
    %cst = arith.constant dense<0.000000e+00> : vector<16x128xf32>
    %2 = tpu.matmul %0, %1, %cst {dimension_numbers = #tpu.dot_dimension_numbers<[1], [0], [0], [1], [0, 0, 1, 1], [], []>} : vector<16x128xbf16>, vector<128x128xbf16>, vector<16x128xf32> -> vector<16x128xf32>
    %c0_3 = arith.constant 0 : index
    %c0_4 = arith.constant 0 : index
    %3 = vector.load %arg3[%c0_3, %c0_4] : memref<1x128xf32, #tpu.memory_space<vmem>>, vector<1x128xf32>
    %4 = vector.broadcast %3 : vector<1x128xf32> to vector<16x128xf32>
    %5 = arith.addf %2, %4 : vector<16x128xf32>
    %cst_5 = arith.constant 0.000000e+00 : f32
    %6 = vector.broadcast %cst_5 : f32 to vector<16x128xf32>
    %7 = arith.maximumf %5, %6 : vector<16x128xf32>
    %8 = arith.truncf %7 : vector<16x128xf32> to vector<16x128xbf16>
    %c0_6 = arith.constant 0 : index
    %c0_7 = arith.constant 0 : index
    %9 = vector.load %arg4[%c0_6, %c0_7] : memref<128x128xbf16, #tpu.memory_space<vmem>>, vector<128x128xbf16>
    %cst_8 = arith.constant dense<0.000000e+00> : vector<16x128xf32>
    %10 = tpu.matmul %8, %9, %cst_8 {dimension_numbers = #tpu.dot_dimension_numbers<[1], [0], [0], [1], [0, 0, 1, 1], [], []>} : vector<16x128xbf16>, vector<128x128xbf16>, vector<16x128xf32> -> vector<16x128xf32>
    %c0_9 = arith.constant 0 : index
    %c0_10 = arith.constant 0 : index
    %11 = vector.load %arg5[%c0_9, %c0_10] : memref<1x128xf32, #tpu.memory_space<vmem>>, vector<1x128xf32>
    %12 = vector.broadcast %11 : vector<1x128xf32> to vector<16x128xf32>
    %13 = arith.addf %10, %12 : vector<16x128xf32>
    %c0_11 = arith.constant 0 : index
    %c0_12 = arith.constant 0 : index
    %14 = vector.load %arg6[%c0_11, %c0_12] : memref<16x128xf32, #tpu.memory_space<vmem>>, vector<16x128xf32>
    tpu.vector_store %arg6[%c0_11, %c0_12], %13 {strides = array<i32>} : memref<16x128xf32, #tpu.memory_space<vmem>>, vector<16x128xf32>,
    return
  }
  func.func @transform_0(%arg0: i32) -> (i32, i32) {
    %c0_i32 = arith.constant 0 : i32
    %c0_i32_0 = arith.constant 0 : i32
    return %arg0, %c0_i32 : i32, i32
  }
  func.func @transform_1(%arg0: i32) -> (i32, i32) {
    %c0_i32 = arith.constant 0 : i32
    %c0_i32_0 = arith.constant 0 : i32
    %c0_i32_1 = arith.constant 0 : i32
    return %c0_i32, %c0_i32_0 : i32, i32
  }
  func.func @transform_2(%arg0: i32) -> (i32, i32) {
    %c0_i32 = arith.constant 0 : i32
    %c0_i32_0 = arith.constant 0 : i32
    %c0_i32_1 = arith.constant 0 : i32
    return %c0_i32, %c0_i32_0 : i32, i32
  }
  func.func @transform_3(%arg0: i32) -> (i32, i32) {
    %c0_i32 = arith.constant 0 : i32
    %c0_i32_0 = arith.constant 0 : i32
    %c0_i32_1 = arith.constant 0 : i32
    return %c0_i32, %c0_i32_0 : i32, i32
  }
  func.func @transform_4(%arg0: i32) -> (i32, i32) {
    %c0_i32 = arith.constant 0 : i32
    %c0_i32_0 = arith.constant 0 : i32
    %c0_i32_1 = arith.constant 0 : i32
    return %c0_i32, %c0_i32_0 : i32, i32
  }
  func.func @transform_5(%arg0: i32) -> (i32, i32) {
    %c0_i32 = arith.constant 0 : i32
    %c0_i32_0 = arith.constant 0 : i32
    return %arg0, %c0_i32 : i32, i32
  }
}

</mosaic_0001>

<bundles_post_ra>
// kernel: _ffn_forward.1
= control target key start
LH: loop header
LB: loop body
LE: loop exit
PB: predicated region body
PF: predicated region fallthrough
CT: control target
= control target key end

     0   :  { %10 = vsyncpa [#allocation3], 0  ;;  %s515_s0 = inlined_call_operand.vmem [shape: bf16[16,128], index: 0, kind: input, shape index: {}]   ;;  %s516_s1 = inlined_call_operand.hbm [shape: bf16[128,128], index: 1, kind: input, shape index: {}]   ;;  %s517_s2 = inlined_call_operand.vmem [shape: f32[1,128], index: 2, kind: input, shape index: {}]   ;;  %s518_s3 = inlined_call_operand.hbm [shape: bf16[128,128], index: 3, kind: input, shape index: {}]   ;;  %s519_s4 = inlined_call_operand.vmem [shape: f32[1,128], index: 4, kind: input, shape index: {}]   ;;  %s520_s5 = inlined_call_operand.vmem [shape: f32[16,128], index: 5, kind: output, shape index: {}]  }
   0x1   :  { %11 = vsyncpa [#allocation5], 0  ;;  %s440_s18 = smov [#allocation2]   ;;  %s392_s22 = scalar_lea.hbm %s516_s1, 1024 }
   0x2   :  { %s19_s19 = sshll.u32 %s440_s18, 4  ;;  %p393_p0 = scmp.ne.s32.totalorder %s516_s1, %s392_s22  ;;  %s20_s19 = int_to_ptr.vmem [resolvable:$true] %s19_s19 }
   0x3   :  { %p396_p1 = scmp.lt.u32.totalorder %s392_s22, %s516_s1 }
   0x5   :  { %p398_p2 = pnand %p396_p1, %p393_p0 }
   0x7   :  { %401 = shalt.err (!%p398_p2)
}
   0x8   :  { %s402_s27 = scalar_lea.vmem %s20_s19, 1024  ;;  %p407_p4 = scmp.lt.s32.totalorder %s20_s19, %s20_s19 }
   0x9   :  { %p403_p3 = scmp.ne.s32.totalorder %s20_s19, %s402_s27  ;;  %p408_p5 = scmp.lt.s32.totalorder %s402_s27, %s402_s27 }
   0xb   :  { %p409_p6 = por %p408_p5, %p407_p4 }
   0xd   :  { %p410_p7 = pnand %p409_p6, %p403_p3 }
   0xf   :  { %413 = shalt.err (!%p410_p7)
}
  0x10   :  { %s441_s28 = smov 64   ;;  %s442_s29 = smov 4  }
  0x11   :  { %25 = dma.hbm_to_vmem [thread:$0]  %s516_s1, 1024, %s20_s19, [#allocation3], %s441_s28, %s441_s28, %s442_s29  }
  0x12   :  { %s443_s7 = smov [#allocation4]   ;;  %s414_s11 = scalar_lea.hbm %s518_s3, 1024 }
  0x13   :  { %s33_s8 = sshll.u32 %s443_s7, 4  ;;  %p415_p8 = scmp.ne.s32.totalorder %s518_s3, %s414_s11  ;;  %s34_s8 = int_to_ptr.vmem [resolvable:$true] %s33_s8 }
  0x14   :  { %p418_p9 = scmp.lt.u32.totalorder %s414_s11, %s518_s3 }
  0x16   :  { %p420_p10 = pnand %p418_p9, %p415_p8 }
  0x18   :  { %423 = shalt.err (!%p420_p10)
}
  0x19   :  { %s424_s16 = scalar_lea.vmem %s34_s8, 1024  ;;  %p429_p12 = scmp.lt.s32.totalorder %s34_s8, %s34_s8 }
  0x1a   :  { %p425_p11 = scmp.ne.s32.totalorder %s34_s8, %s424_s16  ;;  %p430_p13 = scmp.lt.s32.totalorder %s424_s16, %s424_s16 }
  0x1c   :  { %p431_p0 = por %p430_p13, %p429_p12 }
  0x1e   :  { %p432_p1 = pnand %p431_p0, %p425_p11 }
  0x20   :  { %435 = shalt.err (!%p432_p1)
}
  0x21   :  { %39 = dma.hbm_to_vmem [thread:$0]  %s518_s3, 1024, %s34_s8, [#allocation5], %s441_s28, %s441_s28, %s442_s29  }
  0x22   :  { %436 = dma.done.wait [#allocation3], 1024  }
  0x23   :  { %437 = vsyncadd [#allocation3], 4294966272 }
  0x24   :  { %438 = dma.done.wait [#allocation5], 1024  }
  0x25   :  { %439 = vsyncadd [#allocation5], 4294966272  ;;  %v444_v0 = vmov 0.0   ;;  %vm445_vm0 = vmmov 0   ;;  %v375_v1 = vld [vmem:[#allocation2] sm:$0xff]   ;;  %v376_v2 = vld [vmem:[#allocation2 + $0x8] sm:$0xff]  }
  0x26   :  { %329 = vmatprep.subr.bf16.mxu0 %v444_v0  ;;  %345 = vmatprep.mubr.msk.bf16.mxu0 %vm445_vm0, %v444_v0  ;;  %v377_v3 = vld [vmem:[#allocation2 + $0x10] sm:$0xff]   ;;  %v384_v4 = vld [vmem:[#allocation4] sm:$0xff]   ;;  %v378_v5 = vld [vmem:[#allocation2 + $0x18] sm:$0xff]  }
  0x27   :  { %349 = vmatprep.subr.bf16.mxu1 %v444_v0  ;;  %365 = vmatprep.mubr.msk.bf16.mxu1 %vm445_vm0, %v444_v0  ;;  %v385_v6 = vld [vmem:[#allocation4 + $0x8] sm:$0xff]   ;;  %v379_v7 = vld [vmem:[#allocation2 + $0x20] sm:$0xff]   ;;  %v386_v8 = vld [vmem:[#allocation4 + $0x10] sm:$0xff]  }
  0x28   :  { %330 = vmatpush3.bf16.msra.mxu0 %v375_v1  ;;  %350 = vmatpush3.bf16.msra.mxu1 %v384_v4  ;;  %v380_v9 = vld [vmem:[#allocation2 + $0x28] sm:$0xff]   ;;  %v387_v10 = vld [vmem:[#allocation4 + $0x18] sm:$0xff]   ;;  %v381_v11 = vld [vmem:[#allocation2 + $0x30] sm:$0xff]  }
  0x29   :  { %331 = vmatprep.subr.bf16.mxu0 %v444_v0  ;;  %351 = vmatprep.subr.bf16.mxu1 %v444_v0  ;;  %v388_v12 = vld [vmem:[#allocation4 + $0x20] sm:$0xff]   ;;  %v382_v13 = vld [vmem:[#allocation2 + $0x38] sm:$0xff]   ;;  %v389_v14 = vld [vmem:[#allocation4 + $0x28] sm:$0xff]  }
  0x2a   :  { %v383_v15 = vld [vmem:[%s515_s0] sm:$0xff]   ;;  %v390_v16 = vld [vmem:[#allocation4 + $0x30] sm:$0xff]   ;;  %v391_v17 = vld [vmem:[#allocation4 + $0x38] sm:$0xff]  }
  0x2b   :  { %v292_v18 = vld [vmem:[%s517_s2] ss:$0 sm:$0xff] }
  0x2c   :  { %332 = vmatpush3.bf16.msra.mxu0 %v376_v2  ;;  %352 = vmatpush3.bf16.msra.mxu1 %v385_v6  ;;  %v302_v28 = vld [vmem:[%s519_s4] ss:$0 sm:$0xff] }
  0x2d   :  { %333 = vmatprep.subr.bf16.mxu0 %v444_v0  ;;  %353 = vmatprep.subr.bf16.mxu1 %v444_v0 }
  0x30   :  { %334 = vmatpush3.bf16.msra.mxu0 %v377_v3  ;;  %354 = vmatpush3.bf16.msra.mxu1 %v386_v8 }
  0x31   :  { %335 = vmatprep.subr.bf16.mxu0 %v444_v0  ;;  %355 = vmatprep.subr.bf16.mxu1 %v444_v0 }
  0x34   :  { %336 = vmatpush3.bf16.msra.mxu0 %v378_v5  ;;  %356 = vmatpush3.bf16.msra.mxu1 %v387_v10 }
  0x35   :  { %337 = vmatprep.subr.bf16.mxu0 %v444_v0  ;;  %357 = vmatprep.subr.bf16.mxu1 %v444_v0 }
  0x38   :  { %338 = vmatpush3.bf16.msra.mxu0 %v379_v7  ;;  %358 = vmatpush3.bf16.msra.mxu1 %v388_v12 }
  0x39   :  { %339 = vmatprep.subr.bf16.mxu0 %v444_v0  ;;  %359 = vmatprep.subr.bf16.mxu1 %v444_v0 }
  0x3c   :  { %340 = vmatpush3.bf16.msra.mxu0 %v380_v9  ;;  %360 = vmatpush3.bf16.msra.mxu1 %v389_v14 }
  0x3d   :  { %341 = vmatprep.subr.bf16.mxu0 %v444_v0  ;;  %361 = vmatprep.subr.bf16.mxu1 %v444_v0 }
  0x40   :  { %342 = vmatpush3.bf16.msra.mxu0 %v381_v11  ;;  %362 = vmatpush3.bf16.msra.mxu1 %v390_v16 }
  0x41   :  { %343 = vmatprep.subr.bf16.mxu0 %v444_v0  ;;  %363 = vmatprep.subr.bf16.mxu1 %v444_v0 }
  0x44   :  { %344 = vmatpush3.bf16.msra.mxu0 %v382_v13  ;;  %364 = vmatpush3.bf16.msra.mxu1 %v391_v17 }
  0x47   :  { %346 = vmatmul.mubr.bf16.vlgmr.msra.gmra.mrb[0].mxu0 %v383_v15 }
 0x11a   :  { %v162_v19 = vpop.f32.mrb[0].mxu0 }
 0x11b   :  { %v163_v20 = vadd.f32 %v292_v18, %v162_v19  ;;  %v347_v21 = vpop.f32.mrb[1].mxu0 }
 0x11c   :  { %v165_v22 = vpop.f32.mrb[2].mxu0 }
 0x11d   :  { %v166_v23 = vadd.f32 %v292_v18, %v165_v22  ;;  %v348_v24 = vpop.f32.mrb[3].mxu0  ;;  %v169_v25 = vmax.f32 %v163_v20, 0.0 }
 0x11f   :  { %v170_v26 = vmax.f32 %v166_v23, 0.0 }
 0x121   :  { %v171_v27 = vpack.c.bf16 %v170_v26, %v169_v25 }
 0x123   :  { %366 = vmatmul.mubr.bf16.vlgmr.msra.gmra.mrb[0].mxu1 %v171_v27 }
 0x1f6   :  { %v277_v29 = vpop.f32.mrb[0].mxu1 }
 0x1f7   :  { %v278_v30 = vadd.f32 %v302_v28, %v277_v29  ;;  %v367_v31 = vpop.f32.mrb[1].mxu1 }
 0x1f8   :  { %v280_v32 = vpop.f32.mrb[2].mxu1 }
 0x1f9   :  { %284 = vst [vmem:[%s520_s5] sm:$0xff] %v278_v30  ;;  %v281_v33 = vadd.f32 %v302_v28, %v280_v32  ;;  %v368_v34 = vpop.f32.mrb[3].mxu1 }
 0x1fb   :  { %285 = vst [vmem:[%s520_s5 + $0x8] sm:$0xff] %v281_v33 }
 0x1fc   :  { %290 = vsyncpa [#allocation3], 1 }
 0x1fd   :  { %291 = vsyncpa [#allocation5], 1 }

</bundles_post_ra>
